<compile_context>
chip_gen: v6e
topology: v6e:2x2x1
jax: 0.10.0
libtpu: 0.0.40
codegen_flags: <defaults>
</compile_context>

<pallas_src>
import jax
import jax.numpy as jnp
from jax.experimental import pallas as pl
from jax.experimental.pallas import tpu as pltpu


def _vmem_capacity_bytes(default=64 * 1024 * 1024):
    """Physical VMEM per TensorCore; conservative 64 MiB fallback (v7x floor)."""
    try:
        info = pltpu.get_tpu_info()
        cap = getattr(info, "vmem_capacity_bytes", None)
        if cap:
            return int(cap)
    except Exception:
        pass
    return default


def _make_resnet_block_kernel(C, HWp, inv_hw):
    def kernel(x_ref, w1t_ref, b1_ref, w2r_ref, b2_ref, o_ref):
        # ---- global average pool of |x|: segmented lane reduce per channel ----
        # C is a compile-time constant; every slice is a static, 128-aligned
        # lane slab of the dense (Bt, C*HWp) block.
        cols = []
        for c in range(C):
            xc = x_ref[:, c * HWp:(c + 1) * HWp]                       # (Bt, HWp)
            cols.append(jnp.sum(jnp.abs(xc).astype(jnp.float32),
                                axis=-1, keepdims=True))               # (Bt, 1)
        avg = jnp.concatenate(cols, axis=-1) * inv_hw                  # (Bt, C) f32

        # ---- fc: Linear(dim,dim) -> ReLU -> Linear(dim,1) -> Sigmoid ----
        h = jnp.dot(avg, w1t_ref[...],
                    preferred_element_type=jnp.float32) + b1_ref[...]  # (Bt, C)
        h = jnp.maximum(h, 0.0)
        # Width-1 second Linear as a lane reduce (VPU/XLU) instead of an MXU op.
        z = jnp.sum(h * w2r_ref[...], axis=-1, keepdims=True) + b2_ref[0]  # (Bt, 1)
        gate = pl.reciprocal(1.0 + jnp.exp(-z), approx=False)          # sigmoid (EUP)

        thresh = avg * gate                                            # (Bt, C), >= 0

        # ---- soft threshold, channel slab by channel slab ----
        # |x| is recomputed here (one VPU op, hidden under the DMA) instead of
        # keeping a full-block f32 temporary live across the fc chain.
        for c in range(C):
            xc = x_ref[:, c * HWp:(c + 1) * HWp]
            axc = jnp.abs(xc).astype(jnp.float32)
            n_sub = jnp.maximum(axc - thresh[:, c:c + 1], 0.0)
            # thresh >= 0  =>  n_sub == 0 wherever xc == 0, so this select is
            # exactly sign(xc) * n_sub (modulo NaN / -0.0, like jnp.sign).
            o_ref[:, c * HWp:(c + 1) * HWp] = jnp.where(
                xc < 0, -n_sub, n_sub).astype(o_ref.dtype)

    return kernel


def resnet_block_forward(x, w1, b1, w2, b2):
    """x: (B, C, H, W); w1: (dim, dim); b1: (dim,); w2: (1, dim); b2: (1,)."""
    B, C, H, W = x.shape
    HW = H * W
    LANE = 128
    HWp = pl.cdiv(HW, LANE) * LANE          # keep channel slabs 128-lane aligned

    # ---- tile selection (gen-aware) ----
    vmem_cap = _vmem_capacity_bytes()
    vmem_limit = int(vmem_cap * 0.72)       # ~46 MiB on v7x, ~92 MiB on v5e/v6e
    # Working set per grid step ~ 2x input + 2x output blocks (double buffered)
    # + ~1 block of f32 temporaries + tiny resident weights -> ~5 blocks.
    block_budget = min(16 * 1024 * 1024, vmem_limit // 5)

    bytes_per_image = C * HWp * x.dtype.itemsize
    Bt = min(B, max(1, block_budget // bytes_per_image))
    if B >= 2:
        Bt = min(Bt, pl.cdiv(B, 2))         # >= 2 grid steps -> both v7x TCs busy
    if Bt < B:
        Bt = (Bt // 8) * 8                  # sublane rule: Bt % 8 == 0 or Bt == B
    if Bt <= 0 or Bt > B:
        Bt = B
    B_pad = pl.cdiv(B, Bt) * Bt             # zero-pad batch: no ragged last block
    grid = (B_pad // Bt,)

    # ---- lane/sublane-dense 2-D view (free reshape; pad only when needed) ----
    x3 = x.reshape(B, C, HW)
    pad_b, pad_hw = B_pad - B, HWp - HW
    if pad_b or pad_hw:
        x3 = jnp.pad(x3, ((0, pad_b), (0, 0), (0, pad_hw)))
    x2 = x3.reshape(B_pad, C * HWp)

    # Pre-transpose Linear weights so the in-kernel matmul is avg @ W1^T.
    w1t = w1.T.astype(jnp.float32)               # (C, C)
    b1r = b1.reshape(1, C).astype(jnp.float32)   # (1, C)
    w2r = w2.reshape(1, C).astype(jnp.float32)   # (1, C) row for lane reduce
    b2r = b2.reshape(1).astype(jnp.float32)      # (1,) -> SMEM scalar

    kernel = _make_resnet_block_kernel(C, HWp, 1.0 / HW)

    out2 = pl.pallas_call(
        kernel,
        out_shape=jax.ShapeDtypeStruct((B_pad, C * HWp), x.dtype),
        grid=grid,
        in_specs=[
            pl.BlockSpec((Bt, C * HWp), lambda i: (i, 0)),
            pl.BlockSpec((C, C), lambda i: (0, 0)),
            pl.BlockSpec((1, C), lambda i: (0, 0)),
            pl.BlockSpec((1, C), lambda i: (0, 0)),
            pl.BlockSpec(memory_space=pltpu.MemorySpace.SMEM),
        ],
        out_specs=pl.BlockSpec((Bt, C * HWp), lambda i: (i, 0)),
        compiler_params=pltpu.CompilerParams(
            dimension_semantics=("parallel",),
            vmem_limit_bytes=vmem_limit,
        ),
    )(x2, w1t, b1r, w2r, b2r)

    out = out2.reshape(B_pad, C, HWp)[:B, :, :HW]
    return out.reshape(B, C, H, W)


def ref_forward(x, w1, b1, w2, b2):
    """Pure-JAX reference replicating the PyTorch forward exactly."""
    ax = jnp.abs(x)
    avg = jnp.mean(ax, axis=(2, 3))                      # gap + flatten
    h = jnp.maximum(avg @ w1.T + b1, 0.0)                # Linear + ReLU
    gate = jax.nn.sigmoid(h @ w2.T + b2)                 # Linear + Sigmoid -> (B, 1)
    thresh = avg * gate                                  # (B, C)
    sub = ax - thresh[:, :, None, None]
    return jnp.sign(x) * jnp.maximum(sub, 0.0)


if __name__ == "__main__":
    B, C, H, W = 2, 4, 16, 16
    dim = C

    key = jax.random.PRNGKey(0)
    kx, k1, k2, k3, k4 = jax.random.split(key, 5)
    x = jax.random.normal(kx, (B, C, H, W), dtype=jnp.float32)
    w1 = jax.random.normal(k1, (dim, dim), dtype=jnp.float32) * 0.3
    b1 = jax.random.normal(k2, (dim,), dtype=jnp.float32) * 0.1
    w2 = jax.random.normal(k3, (1, dim), dtype=jnp.float32) * 0.3
    b2 = jax.random.normal(k4, (1,), dtype=jnp.float32) * 0.1

    out = resnet_block_forward(x, w1, b1, w2, b2)
    out = jax.block_until_ready(out)

    ref = ref_forward(x, w1, b1, w2, b2)
    assert out.shape == x.shape and out.dtype == x.dtype
    assert jnp.allclose(out, ref, atol=1e-5, rtol=1e-5), "kernel/reference mismatch"

    print("KERNEL_OK")
</pallas_src>

<mosaic_0001>
module attributes {stable_mosaic.version = 11 : i64} {
  func.func @kernel(%arg0: i32, %arg1: memref<2x1024xf32, #tpu.memory_space<vmem>>, %arg2: memref<4x4xf32, #tpu.memory_space<vmem>>, %arg3: memref<1x4xf32, #tpu.memory_space<vmem>>, %arg4: memref<1x4xf32, #tpu.memory_space<vmem>>, %arg5: memref<1xf32, #tpu.memory_space<smem>>, %arg6: memref<2x1024xf32, #tpu.memory_space<vmem>>) attributes {dimension_semantics = [#tpu.dimension_semantics<parallel>], iteration_bounds = array<i64: 1>, scalar_prefetch = 0 : i64, scratch_operands = 0 : i64, tpu.core_type = #tpu.core_type<tc>, window_params = [{transform_indices = @transform_0, window_bounds = array<i64: 2, 1024>}, {pipeline_mode = #tpu.pipeline_mode<synchronous>, transform_indices = @transform_1, window_bounds = array<i64: 4, 4>}, {pipeline_mode = #tpu.pipeline_mode<synchronous>, transform_indices = @transform_2, window_bounds = array<i64: 1, 4>}, {pipeline_mode = #tpu.pipeline_mode<synchronous>, transform_indices = @transform_3, window_bounds = array<i64: 1, 4>}, {transform_indices = @transform_4, window_bounds = array<i64: 1>}, {transform_indices = @transform_5, window_bounds = array<i64: 2, 1024>}]} {
    %c0 = arith.constant 0 : index
    %c0_0 = arith.constant 0 : index
    %0 = vector.load %arg1[%c0, %c0_0] : memref<2x1024xf32, #tpu.memory_space<vmem>>, vector<2x256xf32>
    %1 = math.absf %0 : vector<2x256xf32>
    %cst = arith.constant dense<0.000000e+00> : vector<2xf32>
    %2 = vector.multi_reduction <add>, %1, %cst [1] : vector<2x256xf32> to vector<2xf32>
    %3 = vector.shape_cast %2 : vector<2xf32> to vector<2x1xf32>
    %c0_1 = arith.constant 0 : index
    %c256 = arith.constant 256 : index
    %4 = vector.load %arg1[%c0_1, %c256] : memref<2x1024xf32, #tpu.memory_space<vmem>>, vector<2x256xf32>
    %5 = math.absf %4 : vector<2x256xf32>
    %cst_2 = arith.constant dense<0.000000e+00> : vector<2xf32>
    %6 = vector.multi_reduction <add>, %5, %cst_2 [1] : vector<2x256xf32> to vector<2xf32>
    %7 = vector.shape_cast %6 : vector<2xf32> to vector<2x1xf32>
    %c0_3 = arith.constant 0 : index
    %c512 = arith.constant 512 : index
    %8 = vector.load %arg1[%c0_3, %c512] : memref<2x1024xf32, #tpu.memory_space<vmem>>, vector<2x256xf32>
    %9 = math.absf %8 : vector<2x256xf32>
    %cst_4 = arith.constant dense<0.000000e+00> : vector<2xf32>
    %10 = vector.multi_reduction <add>, %9, %cst_4 [1] : vector<2x256xf32> to vector<2xf32>
    %11 = vector.shape_cast %10 : vector<2xf32> to vector<2x1xf32>
    %c0_5 = arith.constant 0 : index
    %c768 = arith.constant 768 : index
    %12 = vector.load %arg1[%c0_5, %c768] : memref<2x1024xf32, #tpu.memory_space<vmem>>, vector<2x256xf32>
    %13 = math.absf %12 : vector<2x256xf32>
    %cst_6 = arith.constant dense<0.000000e+00> : vector<2xf32>
    %14 = vector.multi_reduction <add>, %13, %cst_6 [1] : vector<2x256xf32> to vector<2xf32>
    %15 = vector.shape_cast %14 : vector<2xf32> to vector<2x1xf32>
    %16 = tpu.concatenate %3, %7, %11, %15 in 1 : vector<2x1xf32>, vector<2x1xf32>, vector<2x1xf32>, vector<2x1xf32> -> vector<2x4xf32>
    %cst_7 = arith.constant 3.906250e-03 : f32
    %17 = vector.broadcast %cst_7 : f32 to vector<2x4xf32>
    %18 = arith.mulf %16, %17 : vector<2x4xf32>
    %c0_8 = arith.constant 0 : index
    %c0_9 = arith.constant 0 : index
    %19 = vector.load %arg2[%c0_8, %c0_9] : memref<4x4xf32, #tpu.memory_space<vmem>>, vector<4x4xf32>
    %cst_10 = arith.constant dense<0.000000e+00> : vector<2x4xf32>
    %20 = tpu.matmul %18, %19, %cst_10 {dimension_numbers = #tpu.dot_dimension_numbers<[1], [0], [0], [1], [0, 0, 1, 1], [], []>} : vector<2x4xf32>, vector<4x4xf32>, vector<2x4xf32> -> vector<2x4xf32>
    %c0_11 = arith.constant 0 : index
    %c0_12 = arith.constant 0 : index
    %21 = vector.load %arg3[%c0_11, %c0_12] : memref<1x4xf32, #tpu.memory_space<vmem>>, vector<1x4xf32>
    %22 = vector.broadcast %21 : vector<1x4xf32> to vector<2x4xf32>
    %23 = arith.addf %20, %22 : vector<2x4xf32>
    %cst_13 = arith.constant 0.000000e+00 : f32
    %24 = vector.broadcast %cst_13 : f32 to vector<2x4xf32>
    %25 = arith.maximumf %23, %24 : vector<2x4xf32>
    %c0_14 = arith.constant 0 : index
    %c0_15 = arith.constant 0 : index
    %26 = vector.load %arg4[%c0_14, %c0_15] : memref<1x4xf32, #tpu.memory_space<vmem>>, vector<1x4xf32>
    %27 = vector.broadcast %26 : vector<1x4xf32> to vector<2x4xf32>
    %28 = arith.mulf %25, %27 : vector<2x4xf32>
    %cst_16 = arith.constant dense<0.000000e+00> : vector<2xf32>
    %29 = vector.multi_reduction <add>, %28, %cst_16 [1] : vector<2x4xf32> to vector<2xf32>
    %30 = vector.shape_cast %29 : vector<2xf32> to vector<2x1xf32>
    %c0_17 = arith.constant 0 : index
    %31 = memref.load %arg5[%c0_17] : memref<1xf32, #tpu.memory_space<smem>>
    %32 = vector.broadcast %31 : f32 to vector<2x1xf32>
    %33 = arith.addf %30, %32 : vector<2x1xf32>
    %cst_18 = arith.constant 0.000000e+00 : f32
    %34 = vector.broadcast %cst_18 : f32 to vector<2x1xf32>
    %35 = arith.subf %34, %33 : vector<2x1xf32>
    %36 = math.exp %35 : vector<2x1xf32>
    %cst_19 = arith.constant 1.000000e+00 : f32
    %37 = vector.broadcast %cst_19 : f32 to vector<2x1xf32>
    %38 = arith.addf %37, %36 : vector<2x1xf32>
    %39 = tpu.reciprocal %38 : vector<2x1xf32> -> vector<2x1xf32>
    %40 = vector.broadcast %39 : vector<2x1xf32> to vector<2x4xf32>
    %41 = arith.mulf %18, %40 : vector<2x4xf32>
    %c0_20 = arith.constant 0 : index
    %c0_21 = arith.constant 0 : index
    %42 = vector.load %arg1[%c0_20, %c0_21] : memref<2x1024xf32, #tpu.memory_space<vmem>>, vector<2x256xf32>
    %43 = math.absf %42 : vector<2x256xf32>
    %44 = vector.extract_strided_slice %41 {offsets = [0, 0], sizes = [2, 1], strides = [1, 1]} : vector<2x4xf32> to vector<2x1xf32>
    %45 = vector.broadcast %44 : vector<2x1xf32> to vector<2x256xf32>
    %46 = arith.subf %43, %45 : vector<2x256xf32>
    %cst_22 = arith.constant 0.000000e+00 : f32
    %47 = vector.broadcast %cst_22 : f32 to vector<2x256xf32>
    %48 = arith.maximumf %46, %47 : vector<2x256xf32>
    %cst_23 = arith.constant 0.000000e+00 : f32
    %49 = vector.broadcast %cst_23 : f32 to vector<2x256xf32>
    %50 = arith.cmpf olt, %42, %49 : vector<2x256xf32>
    %cst_24 = arith.constant 0.000000e+00 : f32
    %51 = vector.broadcast %cst_24 : f32 to vector<2x256xf32>
    %52 = arith.subf %51, %48 : vector<2x256xf32>
    %53 = arith.select %50, %52, %48 : vector<2x256xi1>, vector<2x256xf32>
    %c0_25 = arith.constant 0 : index
    %c0_26 = arith.constant 0 : index
    %54 = vector.load %arg6[%c0_25, %c0_26] : memref<2x1024xf32, #tpu.memory_space<vmem>>, vector<2x256xf32>
    tpu.vector_store %arg6[%c0_25, %c0_26], %53 {strides = array<i32>} : memref<2x1024xf32, #tpu.memory_space<vmem>>, vector<2x256xf32>,
    %c0_27 = arith.constant 0 : index
    %c256_28 = arith.constant 256 : index
    %55 = vector.load %arg1[%c0_27, %c256_28] : memref<2x1024xf32, #tpu.memory_space<vmem>>, vector<2x256xf32>
    %56 = math.absf %55 : vector<2x256xf32>
    %57 = vector.extract_strided_slice %41 {offsets = [0, 1], sizes = [2, 1], strides = [1, 1]} : vector<2x4xf32> to vector<2x1xf32>
    %58 = vector.broadcast %57 : vector<2x1xf32> to vector<2x256xf32>
    %59 = arith.subf %56, %58 : vector<2x256xf32>
    %cst_29 = arith.constant 0.000000e+00 : f32
    %60 = vector.broadcast %cst_29 : f32 to vector<2x256xf32>
    %61 = arith.maximumf %59, %60 : vector<2x256xf32>
    %cst_30 = arith.constant 0.000000e+00 : f32
    %62 = vector.broadcast %cst_30 : f32 to vector<2x256xf32>
    %63 = arith.cmpf olt, %55, %62 : vector<2x256xf32>
    %cst_31 = arith.constant 0.000000e+00 : f32
    %64 = vector.broadcast %cst_31 : f32 to vector<2x256xf32>
    %65 = arith.subf %64, %61 : vector<2x256xf32>
    %66 = arith.select %63, %65, %61 : vector<2x256xi1>, vector<2x256xf32>
    %c0_32 = arith.constant 0 : index
    %c256_33 = arith.constant 256 : index
    %67 = vector.load %arg6[%c0_32, %c256_33] : memref<2x1024xf32, #tpu.memory_space<vmem>>, vector<2x256xf32>
    tpu.vector_store %arg6[%c0_32, %c256_33], %66 {strides = array<i32>} : memref<2x1024xf32, #tpu.memory_space<vmem>>, vector<2x256xf32>,
    %c0_34 = arith.constant 0 : index
    %c512_35 = arith.constant 512 : index
    %68 = vector.load %arg1[%c0_34, %c512_35] : memref<2x1024xf32, #tpu.memory_space<vmem>>, vector<2x256xf32>
    %69 = math.absf %68 : vector<2x256xf32>
    %70 = vector.extract_strided_slice %41 {offsets = [0, 2], sizes = [2, 1], strides = [1, 1]} : vector<2x4xf32> to vector<2x1xf32>
    %71 = vector.broadcast %70 : vector<2x1xf32> to vector<2x256xf32>
    %72 = arith.subf %69, %71 : vector<2x256xf32>
    %cst_36 = arith.constant 0.000000e+00 : f32
    %73 = vector.broadcast %cst_36 : f32 to vector<2x256xf32>
    %74 = arith.maximumf %72, %73 : vector<2x256xf32>
    %cst_37 = arith.constant 0.000000e+00 : f32
    %75 = vector.broadcast %cst_37 : f32 to vector<2x256xf32>
    %76 = arith.cmpf olt, %68, %75 : vector<2x256xf32>
    %cst_38 = arith.constant 0.000000e+00 : f32
    %77 = vector.broadcast %cst_38 : f32 to vector<2x256xf32>
    %78 = arith.subf %77, %74 : vector<2x256xf32>
    %79 = arith.select %76, %78, %74 : vector<2x256xi1>, vector<2x256xf32>
    %c0_39 = arith.constant 0 : index
    %c512_40 = arith.constant 512 : index
    %80 = vector.load %arg6[%c0_39, %c512_40] : memref<2x1024xf32, #tpu.memory_space<vmem>>, vector<2x256xf32>
    tpu.vector_store %arg6[%c0_39, %c512_40], %79 {strides = array<i32>} : memref<2x1024xf32, #tpu.memory_space<vmem>>, vector<2x256xf32>,
    %c0_41 = arith.constant 0 : index
    %c768_42 = arith.constant 768 : index
    %81 = vector.load %arg1[%c0_41, %c768_42] : memref<2x1024xf32, #tpu.memory_space<vmem>>, vector<2x256xf32>
    %82 = math.absf %81 : vector<2x256xf32>
    %83 = vector.extract_strided_slice %41 {offsets = [0, 3], sizes = [2, 1], strides = [1, 1]} : vector<2x4xf32> to vector<2x1xf32>
    %84 = vector.broadcast %83 : vector<2x1xf32> to vector<2x256xf32>
    %85 = arith.subf %82, %84 : vector<2x256xf32>
    %cst_43 = arith.constant 0.000000e+00 : f32
    %86 = vector.broadcast %cst_43 : f32 to vector<2x256xf32>
    %87 = arith.maximumf %85, %86 : vector<2x256xf32>
    %cst_44 = arith.constant 0.000000e+00 : f32
    %88 = vector.broadcast %cst_44 : f32 to vector<2x256xf32>
    %89 = arith.cmpf olt, %81, %88 : vector<2x256xf32>
    %cst_45 = arith.constant 0.000000e+00 : f32
    %90 = vector.broadcast %cst_45 : f32 to vector<2x256xf32>
    %91 = arith.subf %90, %87 : vector<2x256xf32>
    %92 = arith.select %89, %91, %87 : vector<2x256xi1>, vector<2x256xf32>
    %c0_46 = arith.constant 0 : index
    %c768_47 = arith.constant 768 : index
    %93 = vector.load %arg6[%c0_46, %c768_47] : memref<2x1024xf32, #tpu.memory_space<vmem>>, vector<2x256xf32>
    tpu.vector_store %arg6[%c0_46, %c768_47], %92 {strides = array<i32>} : memref<2x1024xf32, #tpu.memory_space<vmem>>, vector<2x256xf32>,
    return
  }
  func.func @transform_0(%arg0: i32) -> (i32, i32) {
    %c0_i32 = arith.constant 0 : i32
    %c0_i32_0 = arith.constant 0 : i32
    return %arg0, %c0_i32 : i32, i32
  }
  func.func @transform_1(%arg0: i32) -> (i32, i32) {
    %c0_i32 = arith.constant 0 : i32
    %c0_i32_0 = arith.constant 0 : i32
    %c0_i32_1 = arith.constant 0 : i32
    return %c0_i32, %c0_i32_0 : i32, i32
  }
  func.func @transform_2(%arg0: i32) -> (i32, i32) {
    %c0_i32 = arith.constant 0 : i32
    %c0_i32_0 = arith.constant 0 : i32
    %c0_i32_1 = arith.constant 0 : i32
    return %c0_i32, %c0_i32_0 : i32, i32
  }
  func.func @transform_3(%arg0: i32) -> (i32, i32) {
    %c0_i32 = arith.constant 0 : i32
    %c0_i32_0 = arith.constant 0 : i32
    %c0_i32_1 = arith.constant 0 : i32
    return %c0_i32, %c0_i32_0 : i32, i32
  }
  func.func @transform_4(%arg0: i32) -> i32 {
    %c0_i32 = arith.constant 0 : i32
    %c0_i32_0 = arith.constant 0 : i32
    return %c0_i32 : i32
  }
  func.func @transform_5(%arg0: i32) -> (i32, i32) {
    %c0_i32 = arith.constant 0 : i32
    %c0_i32_0 = arith.constant 0 : i32
    return %arg0, %c0_i32 : i32, i32
  }
}

</mosaic_0001>

<bundles_post_ra>
// kernel: tpu_custom_call.1
= control target key start
LH: loop header
LB: loop body
LE: loop exit
PB: predicated region body
PF: predicated region fallthrough
CT: control target
= control target key end

     0   :  { %11 = vsyncpa [#allocation4], 0  ;;  %s501_s0 = inlined_call_operand.hbm [shape: f32[2,1024], index: 0, kind: input, shape index: {}]   ;;  %s502_s1 = inlined_call_operand.hbm [shape: f32[4,4], index: 1, kind: input, shape index: {}]   ;;  %s503_s2 = inlined_call_operand.vmem [shape: f32[1,4], index: 2, kind: input, shape index: {}]   ;;  %s504_s3 = inlined_call_operand.vmem [shape: f32[1,4], index: 3, kind: input, shape index: {}]   ;;  %s505_s4 = inlined_call_operand.<no memory space> [shape: f32[1], index: 4, kind: input, shape index: {}]   ;;  %s506_s5 = inlined_call_operand.hbm [shape: f32[2,1024], index: 5, kind: output, shape index: {}]  }
   0x1   :  { %12 = vsyncpa [#allocation7], 0 }
   0x2   :  { %13 = vsyncpa [#allocation5], 0  ;;  %s422_s18 = smov [#allocation3]   ;;  %s423_s20 = smov [#allocation6]  }
   0x3   :  { %s20_s19 = sshll.u32 %s422_s18, 4  ;;  %s30_s21 = sshll.u32 %s423_s20, 4  ;;  %s21_s19 = int_to_ptr.vmem [resolvable:$true] %s20_s19  ;;  %s31_s21 = int_to_ptr.vmem [resolvable:$true] %s30_s21 }
   0x4   :  { %s364_s22 = scalar_lea.vmem %s21_s19, 256  ;;  %p369_p1 = scmp.lt.s32.totalorder %s21_s19, %s21_s19 }
   0x5   :  { %p365_p0 = scmp.ne.s32.totalorder %s21_s19, %s364_s22  ;;  %p370_p2 = scmp.lt.s32.totalorder %s364_s22, %s364_s22 }
   0x7   :  { %p371_p3 = por %p370_p2, %p369_p1 }
   0x9   :  { %p372_p4 = pnand %p371_p3, %p365_p0 }
   0xb   :  { %375 = shalt.err (!%p372_p4)
}
   0xc   :  { %23 = dma.hbm_to_vmem [thread:$0]  %s501_s0, 256, %s21_s19, [#allocation4]  }
   0xd   :  { %s384_s25 = scalar_lea.vmem %s31_s21, 64  ;;  %p389_p6 = scmp.lt.s32.totalorder %s31_s21, %s31_s21 }
   0xe   :  { %p385_p5 = scmp.ne.s32.totalorder %s31_s21, %s384_s25  ;;  %p390_p7 = scmp.lt.s32.totalorder %s384_s25, %s384_s25 }
  0x10   :  { %p391_p8 = por %p390_p7, %p389_p6 }
  0x12   :  { %p392_p9 = pnand %p391_p8, %p385_p5 }
  0x14   :  { %395 = shalt.err (!%p392_p9)
}
  0x15   :  { %33 = dma.hbm_to_vmem [thread:$0]  %s502_s1, 64, %s31_s21, [#allocation7]  }
  0x16   :  { %416 = dma.done.wait [#allocation4], 256  }
  0x17   :  { %417 = vsyncadd [#allocation4], 4294967040 }
  0x18   :  { %418 = dma.done.wait [#allocation7], 64  }
  0x19   :  { %419 = vsyncadd [#allocation7], 4294967232  ;;  %v52_v0 = vlaneseq  ;;  %v424_v1 = vmov 1983009808   ;;  %v472_v6 = vld [vmem:[#allocation3] sm:$0xf]  ;;  %v226_v54 = vstv %s505_s4 }
  0x1a   :  { %v50_v2 = vunpack.c.l.s4 %v424_v1  ;;  %v83_v7 = vld [vmem:[#allocation3 + $0x8] sm:$0xf]  ;;  %v65_v8 = vld [vmem:[#allocation3 + $0x4] sm:$0xf]  ;;  %v47_v9 = vand.u32 2147483647, %v472_v6 }
  0x1b   :  { %v469_v3 = vshrl.u32 %v52_v0, 7  ;;  %v84_v10 = vand.u32 2147483647, %v83_v7  ;;  %vm59_vm0 = vcmask 1041408   ;;  %v66_v11 = vand.u32 2147483647, %v65_v8 }
  0x1c   :  { %v51_v4 = vunpack.c.0.s8 %v50_v2  ;;  %v101_v12 = vld [vmem:[#allocation3 + $0xc] sm:$0xf]  ;;  %v425_v34 = vmov 0.0   ;;  %v126_v35 = vld [vmem:[#allocation6] sm:$0xf]  ;;  %vm138_vm1 = vcmask 1043456  }
  0x1d   :  { %v102_v15 = vand.u32 2147483647, %v101_v12  ;;  %331 = vmatprep.subr.mxu0 %v425_v34  ;;  %vm426_vm2 = vmmov 0   ;;  %vm119_vm3 = vcmask 7168   ;;  %vm121_vm4 = vcmask 15360  }
  0x1e   :  { %v54_v5 = vsub.s32 %v51_v4, %v469_v3  ;;  %332 = vmatpush3.msk.msra.mxu0 %vm138_vm1, %v126_v35  ;;  %333 = vmatprep.mubr.msk.f32.mxu0 %vm426_vm2, %v425_v34  ;;  %vm123_vm5 = vcmask 23552   ;;  %vm134_vm6 = vcmask 31744   ;;  %v325_v44 = vld [vmem:[%s503_s2] ss:$0 sm:$0xff]  ;;  %vm221_vm7 = vcmask 25600   ;;  %s432_s2 = smov [#allocation8]  }
  0x1f   :  { %v328_v48 = vld [vmem:[%s504_s3] ss:$0 sm:$0xff]  ;;  %v427_v52 = vmov 1   ;;  %v428_v53 = vmov 0   ;;  %v429_v63 = vmov 2   ;;  %v430_v0 = vmov 3  }
  0x20   :  { %v55_v13 = vrot.slane %v47_v9, %v54_v5  ;;  %v92_v14 = vrot.slane %v84_v10, %v54_v5  ;;  %v74_v16 = vrot.slane %v66_v11, %v54_v5  ;;  %v110_v22 = vrot.slane %v102_v15, %v54_v5  ;;  %348 = vset.pattern.permute.xlu0 %v427_v52  ;;  %v252_v5 = vld [vmem:[#allocation3 + $0x4] sm:$0xf]  ;;  %s315_s3 = sshll.u32 %s432_s2, 4  ;;  %s316_s3 = int_to_ptr.vmem [resolvable:$true] %s315_s3 }
  0x21   :  { %347 = vset.pattern.permute.xlu1 %v428_v53  ;;  %v431_v1 = vmov 269488144   ;;  %v253_v8 = vand.u32 2147483647, %v252_v5  ;;  %vm248_vm8 = vcmp.lt.f32.partialorder %v472_v6, 0.0  ;;  %vm267_vm9 = vcmp.lt.f32.partialorder %v252_v5, 0.0  ;;  %p401_p11 = scmp.lt.s32.totalorder %s316_s3, %s316_s3 }
  0x22   :  { %v56_v17 = vcombine.high %v55_v13, %v55_v13  ;;  %v60_v18 = vsel %vm59_vm0, %v55_v13, 0.0  ;;  %v93_v19 = vcombine.high %v92_v14, %v92_v14  ;;  %v96_v20 = vsel %vm59_vm0, %v92_v14, 0.0  ;;  %v271_v14 = vld [vmem:[#allocation3 + $0x8] sm:$0xf]  ;;  %s396_s4 = scalar_lea.vmem %s316_s3, 256 }
  0x23   :  { %v75_v21 = vcombine.high %v74_v16, %v74_v16  ;;  %v78_v25 = vsel %vm59_vm0, %v74_v16, 0.0  ;;  %v111_v29 = vcombine.high %v110_v22, %v110_v22  ;;  %v114_v30 = vsel %vm59_vm0, %v110_v22, 0.0  ;;  %v290_v22 = vld [vmem:[#allocation3 + $0xc] sm:$0xf]  ;;  %p397_p10 = scmp.ne.s32.totalorder %s316_s3, %s396_s4  ;;  %p402_p12 = scmp.lt.s32.totalorder %s396_s4, %s396_s4 }
  0x24   :  { %v61_v23 = vsel %vm59_vm0, %v56_v17, 0.0  ;;  %v97_v24 = vsel %vm59_vm0, %v93_v19, 0.0  ;;  %v239_v2 = vunpack.c.l.s4 %v431_v1  ;;  %v272_v17 = vand.u32 2147483647, %v271_v14 }
  0x25   :  { %v62_v26 = vadd.f32 %v61_v23, %v60_v18  ;;  %v98_v27 = vadd.f32 %v97_v24, %v96_v20  ;;  %v79_v28 = vsel %vm59_vm0, %v75_v21, 0.0  ;;  %v115_v32 = vsel %vm59_vm0, %v111_v29, 0.0  ;;  %p403_p13 = por %p402_p12, %p401_p11 }
  0x26   :  { %v80_v31 = vadd.f32 %v79_v28, %v78_v25  ;;  %v116_v33 = vadd.f32 %v115_v32, %v114_v30  ;;  %v240_v4 = vunpack.c.0.s8 %v239_v2  ;;  %vm286_vm10 = vcmp.lt.f32.partialorder %v271_v14, 0.0 }
  0x27   :  { %63 = vadd.xlane.f32.xlu0 %v62_v26  ;;  %99 = vadd.xlane.f32.xlu1 %v98_v27  ;;  %v291_v27 = vand.u32 2147483647, %v290_v22  ;;  %vm305_vm11 = vcmp.lt.f32.partialorder %v290_v22, 0.0  ;;  %p404_p0 = pnand %p403_p13, %p397_p10 }
  0x28   :  { %v243_v7 = vsub.s32 %v240_v4, %v469_v3 }
  0x2b   :  { %81 = vadd.xlane.f32.xlu0 %v80_v31  ;;  %117 = vadd.xlane.f32.xlu1 %v116_v33 }
  0xb0   :  { %v64_v36 = vpop.xlane.xlu0 %63  ;;  %v100_v37 = vpop.xlane.xlu1 %99 }
  0xb4   :  { %v82_v38 = vpop.xlane.xlu0 %81  ;;  %v118_v39 = vpop.xlane.xlu1 %117 }
  0xb5   :  { %v120_v40 = vsel %vm119_vm3, %v64_v36, %v82_v38 }
  0xb6   :  { %v122_v41 = vsel %vm121_vm4, %v120_v40, %v100_v37 }
  0xb7   :  { %v124_v42 = vsel %vm123_vm5, %v122_v41, %v118_v39 }
  0xb8   :  { %v125_v43 = vmul.f32 0.00390625, %v124_v42 }
  0xba   :  { %334 = vmatmul.mubr.msk.f32.vlgmr.msra.gmra.mxu0 %vm134_vm6, %v125_v43 }
 0x17a   :  { %v208_v45 = vpop.f32.mrf.mxu0 }
 0x17b   :  { %v209_v46 = vadd.f32 %v325_v44, %v208_v45 }
 0x17c   :  { %v335_v47 = vpop.f32.mrf.mxu0 }
 0x17d   :  { %v212_v49 = vmax.f32 %v209_v46, 0.0 }
 0x17f   :  { %v220_v50 = vmul.f32 %v328_v48, %v212_v49 }
 0x181   :  { %v222_v51 = vsel %vm221_vm7, %v220_v50, 0.0 }
 0x182   :  { %223 = vadd.xlane.f32.xlu0 %v222_v51 }
 0x20b   :  { %v224_v55 = vpop.xlane.xlu0 %223 }
 0x20c   :  { %v227_v56 = vadd.f32 %v226_v54, %v224_v55 }
 0x20e   :  { %v228_v57 = vsub.f32 0.0, %v227_v56 }
 0x210   :  { %v229_v58 = vmul.f32 1.442695, %v228_v57 }
 0x212   :  { %352 = vpow2.f32 %v229_v58 }
 0x21f   :  { %v353_v59 = vpop.eup %352 }
 0x220   :  { %v231_v60 = vadd.f32 1.0, %v353_v59 }
 0x222   :  { %354 = vrcp.f32 %v231_v60 }
 0x22f   :  { %v355_v61 = vpop.eup %354 }
 0x230   :  { %v233_v62 = vmul.f32 %v355_v61, %v125_v43 }
 0x232   :  { %255 = vperm.xlu0 %348, %v233_v62   ;;  %236 = vperm.xlu1 %347, %v233_v62  }
 0x236   :  { %349 = vset.pattern.permute.xlu1 %v429_v63  ;;  %351 = vset.pattern.permute.xlu0 %v430_v0 }
 0x237   :  { %274 = vperm.xlu1 %349, %v233_v62  }
 0x23b   :  { %350 = vset.pattern.permute.xlu1 %v430_v0 }
 0x23c   :  { %293 = vperm.xlu1 %350, %v233_v62  }
 0x2ad   :  { %v256_v10 = vpop.permute.xlu0 %255  ;;  %v237_v11 = vpop.permute.xlu1 %236 }
 0x2ae   :  { %v263_v12 = vrot.slane %v256_v10, %v243_v7  ;;  %v244_v13 = vrot.slane %v237_v11, %v243_v7 }
 0x2b0   :  { %v265_v15 = vsub.f32 %v253_v8, %v263_v12  ;;  %v246_v16 = vsub.f32 %v47_v9, %v244_v13 }
 0x2b2   :  { %v266_v18 = vmax.f32 %v265_v15, 0.0  ;;  %v247_v19 = vmax.f32 %v246_v16, 0.0  ;;  %v275_v20 = vpop.permute.xlu1 %274 }
 0x2b3   :  { %v282_v21 = vrot.slane %v275_v20, %v243_v7 }
 0x2b4   :  { %v268_v3 = vsub.f32 0.0, %v266_v18  ;;  %v249_v23 = vsub.f32 0.0, %v247_v19 }
 0x2b5   :  { %v284_v24 = vsub.f32 %v272_v17, %v282_v21 }
 0x2b6   :  { %v269_v25 = vsel %vm267_vm9, %v268_v3, %v266_v18  ;;  %v250_v26 = vsel %vm248_vm8, %v249_v23, %v247_v19 }
 0x2b7   :  { %270 = vst [vmem:[#allocation8 + $0x4] sm:$0xf] %v269_v25  ;;  %251 = vst [vmem:[#allocation8] sm:$0xf] %v250_v26  ;;  %v285_v28 = vmax.f32 %v284_v24, 0.0  ;;  %v294_v29 = vpop.permute.xlu1 %293 }
 0x2b8   :  { %v301_v9 = vrot.slane %v294_v29, %v243_v7 }
 0x2b9   :  { %v287_v30 = vsub.f32 0.0, %v285_v28 }
 0x2ba   :  { %v303_v31 = vsub.f32 %v291_v27, %v301_v9 }
 0x2bb   :  { %v288_v32 = vsel %vm286_vm10, %v287_v30, %v285_v28 }
 0x2bc   :  { %289 = vst [vmem:[#allocation8 + $0x8] sm:$0xf] %v288_v32  ;;  %v304_v6 = vmax.f32 %v303_v31, 0.0 }
 0x2be   :  { %v306_v33 = vsub.f32 0.0, %v304_v6 }
 0x2c0   :  { %v307_v34 = vsel %vm305_vm11, %v306_v33, %v304_v6 }
 0x2c1   :  { %308 = vst [vmem:[#allocation8 + $0xc] sm:$0xf] %v307_v34 }
 0x2c2   :  { %407 = shalt.err (!%p404_p0)
}
 0x2c3   :  { %318 = dma.vmem_to_hbm [thread:$0]  %s316_s3, 256, %s506_s5, [#allocation5]  }
 0x2c4   :  { %420 = dma.done.wait [#allocation5], 256  }
 0x2c5   :  { %421 = vsyncadd [#allocation5], 4294967040 }
 0x2c6   :  { %322 = vsyncpa [#allocation4], 1 }
 0x2c7   :  { %323 = vsyncpa [#allocation7], 1 }
 0x2c8   :  { %324 = vsyncpa [#allocation5], 1 }

</bundles_post_ra>
